<compile_context>
chip_gen: v7x
topology: tpu7x:2x2x1
jax: 0.10.0
libtpu: 0.0.40
codegen_flags: <defaults>
</compile_context>

<pallas_src>
import functools

import jax
import jax.numpy as jnp
from jax import lax
from jax.experimental import pallas as pl
from jax.experimental.pallas import tpu as pltpu

LANES = 128


def lstm_tagger_kernel(ids_ref, emb_ref, wih_ref, whh_ref, b_ref,
                       wout_ref, bout_ref, out_ref, *, num_tags):
    """Full forward pass for one sentence on one TensorCore.

    ids_ref : (T, 1) int32            sentence token ids (VMEM)
    emb_ref : (V, E) f32              embedding table
    wih_ref : (E, 4H) f32             input->gates weights (gate order i, f, g, o)
    whh_ref : (H, 4H) bf16            hidden->gates weights (bf16 -> single-pass MXU per step)
    b_ref   : (1, 4H) f32             bias_ih + bias_hh
    wout_ref: (H, Kp) f32             hidden2tag weight, lane-padded to Kp=128
    bout_ref: (1, Kp) f32             hidden2tag bias, lane-padded
    out_ref : (T, Kp) f32             log_softmax(tag_space); padded tag lanes ~ -1e30
    """
    T = out_ref.shape[0]
    Kp = out_ref.shape[1]
    V = emb_ref.shape[0]
    H = whh_ref.shape[0]
    G = whh_ref.shape[1]  # 4H (= 128 lanes at these sizes)

    # ---- embedding lookup as a one-hot MXU matmul (no dependent dynamic row loads / concat) ----
    ids = ids_ref[...]                                                      # (T, 1) int32
    vocab_iota = lax.broadcasted_iota(jnp.int32, (T, V), 1)
    one_hot = (vocab_iota == ids).astype(jnp.float32)                       # (T, V)
    emb = jnp.dot(one_hot, emb_ref[...], preferred_element_type=jnp.float32)  # (T, E) f32, exact

    # ---- x-part of all gates for every timestep: one MXU matmul, kept in registers ----
    xg = jnp.dot(emb, wih_ref[...], preferred_element_type=jnp.float32) + b_ref[...]  # (T, 4H)

    # ---- loop invariants hoisted out of the serial recurrence ----
    whh_bf16 = whh_ref[...]                                                 # (H, 4H) bf16
    lane = lax.broadcasted_iota(jnp.int32, (1, G), 1)
    g_mask = (lane >= 2 * H) & (lane < 3 * H)                               # tanh lanes (gate g)
    # sigmoid(x) = 0.5*(tanh(x/2)+1): pre-scale i/f/o lanes by 0.5, fix up with *0.5+0.5 after
    # the single tanh push.  g lanes pass through unchanged.
    pre_scale = jnp.where(g_mask, 1.0, 0.5).astype(jnp.float32)             # (1, 4H)
    post_scale = pre_scale
    post_bias = jnp.where(g_mask, 0.0, 0.5).astype(jnp.float32)

    h = jnp.zeros((1, H), jnp.float32)   # PyTorch module inits hidden/cell to zeros
    c = jnp.zeros((1, H), jnp.float32)
    hs = []
    # Fully unrolled static recurrence (T is a compile-time constant, small).
    for t in range(T):
        hg = jnp.dot(h.astype(jnp.bfloat16), whh_bf16,
                     preferred_element_type=jnp.float32)                    # (1, 4H) single-pass MXU
        gates = xg[t:t + 1, :] + hg
        tg = jnp.tanh(gates * pre_scale)                                    # one EUP push, all 4 gates
        act = tg * post_scale + post_bias                                   # sigmoid(i/f/o), tanh(g)
        i_g = act[:, 0:H]
        f_g = act[:, H:2 * H]
        g_g = act[:, 2 * H:3 * H]
        o_g = act[:, 3 * H:4 * H]
        c = f_g * c + i_g * g_g
        h = o_g * jnp.tanh(c)
        hs.append(h)

    hs_all = jnp.concatenate(hs, axis=0)                                    # (T, H)

    # ---- hidden2tag into a lane-dense (T, Kp) slab; mask padded tag columns ----
    tag = jnp.dot(hs_all, wout_ref[...], preferred_element_type=jnp.float32) + bout_ref[...]
    col = lax.broadcasted_iota(jnp.int32, (T, Kp), 1)
    tag = jnp.where(col < num_tags, tag, jnp.float32(-1e30))

    # log_softmax along the tag axis; padded columns contribute 0 to the sum
    m = jnp.max(tag, axis=1, keepdims=True)
    shifted = tag - m
    lse = jnp.log(jnp.sum(jnp.exp(shifted), axis=1, keepdims=True))
    out_ref[...] = shifted - lse


def lstm_tagger_forward(sentence, params):
    T = sentence.shape[0]
    V, E = params["embedding"].shape
    H = params["w_hh"].shape[0]
    K = params["w_out"].shape[1]
    Kp = ((K + LANES - 1) // LANES) * LANES                                 # lane-dense output width

    ids2d = sentence.reshape(T, 1).astype(jnp.int32)
    emb_table = params["embedding"].astype(jnp.float32)                     # (V, E)
    w_ih = params["w_ih"].astype(jnp.float32)                               # (E, 4H)
    w_hh = params["w_hh"].astype(jnp.bfloat16)                              # (H, 4H) recurrent operand
    b = (params["b_ih"] + params["b_hh"]).reshape(1, 4 * H).astype(jnp.float32)
    w_out = jnp.zeros((H, Kp), jnp.float32).at[:, :K].set(params["w_out"].astype(jnp.float32))
    b_out = jnp.zeros((1, Kp), jnp.float32).at[:, :K].set(
        params["b_out"].reshape(1, K).astype(jnp.float32))

    full = lambda shape: pl.BlockSpec(shape, lambda: tuple(0 for _ in shape))

    out_padded = pl.pallas_call(
        functools.partial(lstm_tagger_kernel, num_tags=K),
        out_shape=jax.ShapeDtypeStruct((T, Kp), jnp.float32),
        in_specs=[
            full((T, 1)),          # token ids
            full((V, E)),
            full((E, 4 * H)),
            full((H, 4 * H)),
            full((1, 4 * H)),
            full((H, Kp)),
            full((1, Kp)),
        ],
        out_specs=full((T, Kp)),
    )(ids2d, emb_table, w_ih, w_hh, b, w_out, b_out)

    return out_padded[:, :K]


def lstm_tagger_reference(sentence, params):
    """Pure-JAX f32 reference matching the PyTorch LSTMTagger forward."""
    emb = params["embedding"][sentence].astype(jnp.float32)                 # (T, E)
    H = params["w_hh"].shape[0]
    b = params["b_ih"] + params["b_hh"]
    h = jnp.zeros((H,), jnp.float32)
    c = jnp.zeros((H,), jnp.float32)
    hs = []
    for t in range(sentence.shape[0]):
        gates = emb[t] @ params["w_ih"] + h @ params["w_hh"] + b
        i_g = jax.nn.sigmoid(gates[0:H])
        f_g = jax.nn.sigmoid(gates[H:2 * H])
        g_g = jnp.tanh(gates[2 * H:3 * H])
        o_g = jax.nn.sigmoid(gates[3 * H:4 * H])
        c = f_g * c + i_g * g_g
        h = o_g * jnp.tanh(c)
        hs.append(h)
    hs = jnp.stack(hs)                                                      # (T, H)
    tag = hs @ params["w_out"] + params["b_out"]
    return jax.nn.log_softmax(tag, axis=1)


def make_params(key, embedding_dim, hidden_dim, vocab_size, tagset_size):
    ks = jax.random.split(key, 7)
    scale = 0.1
    return {
        "embedding": scale * jax.random.normal(ks[0], (vocab_size, embedding_dim), jnp.float32),
        "w_ih": scale * jax.random.normal(ks[1], (embedding_dim, 4 * hidden_dim), jnp.float32),
        "w_hh": scale * jax.random.normal(ks[2], (hidden_dim, 4 * hidden_dim), jnp.float32),
        "b_ih": scale * jax.random.normal(ks[3], (4 * hidden_dim,), jnp.float32),
        "b_hh": scale * jax.random.normal(ks[4], (4 * hidden_dim,), jnp.float32),
        "w_out": scale * jax.random.normal(ks[5], (hidden_dim, tagset_size), jnp.float32),
        "b_out": scale * jax.random.normal(ks[6], (tagset_size,), jnp.float32),
    }


if __name__ == "__main__":
    EMBEDDING_DIM = 32
    HIDDEN_DIM = 32
    VOCAB_SIZE = 16
    TAGSET_SIZE = 8
    SEQ_LEN = 8

    key = jax.random.PRNGKey(0)
    pkey, skey = jax.random.split(key)
    params = make_params(pkey, EMBEDDING_DIM, HIDDEN_DIM, VOCAB_SIZE, TAGSET_SIZE)
    sentence = jax.random.randint(skey, (SEQ_LEN,), 0, VOCAB_SIZE, dtype=jnp.int32)

    tag_scores = lstm_tagger_forward(sentence, params)
    jax.block_until_ready(tag_scores)

    assert tag_scores.shape == (SEQ_LEN, TAGSET_SIZE)
    # log_softmax rows must sum (in prob space) to ~1
    assert bool(jnp.allclose(jnp.sum(jnp.exp(tag_scores), axis=1), 1.0, atol=1e-5))
    # match the pure-JAX f32 reference of the PyTorch module; tolerance accounts for the bf16
    # operands on the recurrent matmul (everything else is f32)
    ref = lstm_tagger_reference(sentence, params)
    assert bool(jnp.allclose(tag_scores, ref, atol=1e-2, rtol=1e-2))
    print("KERNEL_OK")
</pallas_src>

<mosaic_0001>
module attributes {stable_mosaic.version = 11 : i64} {
  func.func @lstm_tagger_kernel(%arg0: memref<8x1xi32, #tpu.memory_space<vmem>>, %arg1: memref<16x32xf32, #tpu.memory_space<vmem>>, %arg2: memref<32x128xf32, #tpu.memory_space<vmem>>, %arg3: memref<32x128xbf16, #tpu.memory_space<vmem>>, %arg4: memref<1x128xf32, #tpu.memory_space<vmem>>, %arg5: memref<32x128xf32, #tpu.memory_space<vmem>>, %arg6: memref<1x128xf32, #tpu.memory_space<vmem>>, %arg7: memref<8x128xf32, #tpu.memory_space<vmem>>) attributes {dimension_semantics = [], scalar_prefetch = 0 : i64, scratch_operands = 0 : i64, tpu.core_type = #tpu.core_type<tc>} {
    %c0 = arith.constant 0 : index
    %c0_0 = arith.constant 0 : index
    %0 = vector.load %arg0[%c0, %c0_0] : memref<8x1xi32, #tpu.memory_space<vmem>>, vector<8x1xi32>
    %1 = tpu.iota {dimensions = array<i32: 1>} : vector<8x16xi32>
    %2 = vector.broadcast %0 : vector<8x1xi32> to vector<8x16xi32>
    %3 = arith.cmpi eq, %1, %2 : vector<8x16xi32>
    %4 = arith.extui %3 : vector<8x16xi1> to vector<8x16xi32>
    %5 = arith.sitofp %4 : vector<8x16xi32> to vector<8x16xf32>
    %c0_1 = arith.constant 0 : index
    %c0_2 = arith.constant 0 : index
    %6 = vector.load %arg1[%c0_1, %c0_2] : memref<16x32xf32, #tpu.memory_space<vmem>>, vector<16x32xf32>
    %cst = arith.constant dense<0.000000e+00> : vector<8x32xf32>
    %7 = tpu.matmul %5, %6, %cst {dimension_numbers = #tpu.dot_dimension_numbers<[1], [0], [0], [1], [0, 0, 1, 1], [], []>} : vector<8x16xf32>, vector<16x32xf32>, vector<8x32xf32> -> vector<8x32xf32>
    %c0_3 = arith.constant 0 : index
    %c0_4 = arith.constant 0 : index
    %8 = vector.load %arg2[%c0_3, %c0_4] : memref<32x128xf32, #tpu.memory_space<vmem>>, vector<32x128xf32>
    %cst_5 = arith.constant dense<0.000000e+00> : vector<8x128xf32>
    %9 = tpu.matmul %7, %8, %cst_5 {dimension_numbers = #tpu.dot_dimension_numbers<[1], [0], [0], [1], [0, 0, 1, 1], [], []>} : vector<8x32xf32>, vector<32x128xf32>, vector<8x128xf32> -> vector<8x128xf32>
    %c0_6 = arith.constant 0 : index
    %c0_7 = arith.constant 0 : index
    %10 = vector.load %arg4[%c0_6, %c0_7] : memref<1x128xf32, #tpu.memory_space<vmem>>, vector<1x128xf32>
    %11 = vector.broadcast %10 : vector<1x128xf32> to vector<8x128xf32>
    %12 = arith.addf %9, %11 : vector<8x128xf32>
    %c0_8 = arith.constant 0 : index
    %c0_9 = arith.constant 0 : index
    %13 = vector.load %arg3[%c0_8, %c0_9] : memref<32x128xbf16, #tpu.memory_space<vmem>>, vector<32x128xbf16>
    %14 = tpu.iota {dimensions = array<i32: 1>} : vector<1x128xi32>
    %c64_i32 = arith.constant 64 : i32
    %15 = vector.broadcast %c64_i32 : i32 to vector<1x128xi32>
    %16 = arith.cmpi sge, %14, %15 : vector<1x128xi32>
    %c96_i32 = arith.constant 96 : i32
    %17 = vector.broadcast %c96_i32 : i32 to vector<1x128xi32>
    %18 = arith.cmpi slt, %14, %17 : vector<1x128xi32>
    %19 = arith.andi %16, %18 : vector<1x128xi1>
    %cst_10 = arith.constant 1.000000e+00 : f32
    %cst_11 = arith.constant 5.000000e-01 : f32
    %20 = vector.broadcast %cst_10 : f32 to vector<1x128xf32>
    %21 = vector.broadcast %cst_11 : f32 to vector<1x128xf32>
    %22 = arith.select %19, %20, %21 : vector<1x128xi1>, vector<1x128xf32>
    %cst_12 = arith.constant 0.000000e+00 : f32
    %cst_13 = arith.constant 5.000000e-01 : f32
    %23 = vector.broadcast %cst_12 : f32 to vector<1x128xf32>
    %24 = vector.broadcast %cst_13 : f32 to vector<1x128xf32>
    %25 = arith.select %19, %23, %24 : vector<1x128xi1>, vector<1x128xf32>
    %cst_14 = arith.constant 0.000000e+00 : f32
    %26 = vector.broadcast %cst_14 : f32 to vector<1x32xf32>
    %cst_15 = arith.constant 0.000000e+00 : f32
    %27 = vector.broadcast %cst_15 : f32 to vector<1x32xf32>
    %28 = arith.truncf %26 : vector<1x32xf32> to vector<1x32xbf16>
    %cst_16 = arith.constant dense<0.000000e+00> : vector<1x128xf32>
    %29 = tpu.matmul %28, %13, %cst_16 {dimension_numbers = #tpu.dot_dimension_numbers<[1], [0], [0], [1], [0, 0, 1, 1], [], []>} : vector<1x32xbf16>, vector<32x128xbf16>, vector<1x128xf32> -> vector<1x128xf32>
    %30 = vector.extract_strided_slice %12 {offsets = [0, 0], sizes = [1, 128], strides = [1, 1]} : vector<8x128xf32> to vector<1x128xf32>
    %31 = arith.addf %30, %29 : vector<1x128xf32>
    %32 = arith.mulf %31, %22 : vector<1x128xf32>
    %33 = math.tanh %32 : vector<1x128xf32>
    %34 = arith.mulf %33, %22 : vector<1x128xf32>
    %35 = arith.addf %34, %25 : vector<1x128xf32>
    %36 = vector.extract_strided_slice %35 {offsets = [0, 0], sizes = [1, 32], strides = [1, 1]} : vector<1x128xf32> to vector<1x32xf32>
    %37 = vector.extract_strided_slice %35 {offsets = [0, 32], sizes = [1, 32], strides = [1, 1]} : vector<1x128xf32> to vector<1x32xf32>
    %38 = vector.extract_strided_slice %35 {offsets = [0, 64], sizes = [1, 32], strides = [1, 1]} : vector<1x128xf32> to vector<1x32xf32>
    %39 = vector.extract_strided_slice %35 {offsets = [0, 96], sizes = [1, 32], strides = [1, 1]} : vector<1x128xf32> to vector<1x32xf32>
    %40 = arith.mulf %37, %27 : vector<1x32xf32>
    %41 = arith.mulf %36, %38 : vector<1x32xf32>
    %42 = arith.addf %40, %41 : vector<1x32xf32>
    %43 = math.tanh %42 : vector<1x32xf32>
    %44 = arith.mulf %39, %43 : vector<1x32xf32>
    %45 = arith.truncf %44 : vector<1x32xf32> to vector<1x32xbf16>
    %cst_17 = arith.constant dense<0.000000e+00> : vector<1x128xf32>
    %46 = tpu.matmul %45, %13, %cst_17 {dimension_numbers = #tpu.dot_dimension_numbers<[1], [0], [0], [1], [0, 0, 1, 1], [], []>} : vector<1x32xbf16>, vector<32x128xbf16>, vector<1x128xf32> -> vector<1x128xf32>
    %47 = vector.extract_strided_slice %12 {offsets = [1, 0], sizes = [1, 128], strides = [1, 1]} : vector<8x128xf32> to vector<1x128xf32>
    %48 = arith.addf %47, %46 : vector<1x128xf32>
    %49 = arith.mulf %48, %22 : vector<1x128xf32>
    %50 = math.tanh %49 : vector<1x128xf32>
    %51 = arith.mulf %50, %22 : vector<1x128xf32>
    %52 = arith.addf %51, %25 : vector<1x128xf32>
    %53 = vector.extract_strided_slice %52 {offsets = [0, 0], sizes = [1, 32], strides = [1, 1]} : vector<1x128xf32> to vector<1x32xf32>
    %54 = vector.extract_strided_slice %52 {offsets = [0, 32], sizes = [1, 32], strides = [1, 1]} : vector<1x128xf32> to vector<1x32xf32>
    %55 = vector.extract_strided_slice %52 {offsets = [0, 64], sizes = [1, 32], strides = [1, 1]} : vector<1x128xf32> to vector<1x32xf32>
    %56 = vector.extract_strided_slice %52 {offsets = [0, 96], sizes = [1, 32], strides = [1, 1]} : vector<1x128xf32> to vector<1x32xf32>
    %57 = arith.mulf %54, %42 : vector<1x32xf32>
    %58 = arith.mulf %53, %55 : vector<1x32xf32>
    %59 = arith.addf %57, %58 : vector<1x32xf32>
    %60 = math.tanh %59 : vector<1x32xf32>
    %61 = arith.mulf %56, %60 : vector<1x32xf32>
    %62 = arith.truncf %61 : vector<1x32xf32> to vector<1x32xbf16>
    %cst_18 = arith.constant dense<0.000000e+00> : vector<1x128xf32>
    %63 = tpu.matmul %62, %13, %cst_18 {dimension_numbers = #tpu.dot_dimension_numbers<[1], [0], [0], [1], [0, 0, 1, 1], [], []>} : vector<1x32xbf16>, vector<32x128xbf16>, vector<1x128xf32> -> vector<1x128xf32>
    %64 = vector.extract_strided_slice %12 {offsets = [2, 0], sizes = [1, 128], strides = [1, 1]} : vector<8x128xf32> to vector<1x128xf32>
    %65 = arith.addf %64, %63 : vector<1x128xf32>
    %66 = arith.mulf %65, %22 : vector<1x128xf32>
    %67 = math.tanh %66 : vector<1x128xf32>
    %68 = arith.mulf %67, %22 : vector<1x128xf32>
    %69 = arith.addf %68, %25 : vector<1x128xf32>
    %70 = vector.extract_strided_slice %69 {offsets = [0, 0], sizes = [1, 32], strides = [1, 1]} : vector<1x128xf32> to vector<1x32xf32>
    %71 = vector.extract_strided_slice %69 {offsets = [0, 32], sizes = [1, 32], strides = [1, 1]} : vector<1x128xf32> to vector<1x32xf32>
    %72 = vector.extract_strided_slice %69 {offsets = [0, 64], sizes = [1, 32], strides = [1, 1]} : vector<1x128xf32> to vector<1x32xf32>
    %73 = vector.extract_strided_slice %69 {offsets = [0, 96], sizes = [1, 32], strides = [1, 1]} : vector<1x128xf32> to vector<1x32xf32>
    %74 = arith.mulf %71, %59 : vector<1x32xf32>
    %75 = arith.mulf %70, %72 : vector<1x32xf32>
    %76 = arith.addf %74, %75 : vector<1x32xf32>
    %77 = math.tanh %76 : vector<1x32xf32>
    %78 = arith.mulf %73, %77 : vector<1x32xf32>
    %79 = arith.truncf %78 : vector<1x32xf32> to vector<1x32xbf16>
    %cst_19 = arith.constant dense<0.000000e+00> : vector<1x128xf32>
    %80 = tpu.matmul %79, %13, %cst_19 {dimension_numbers = #tpu.dot_dimension_numbers<[1], [0], [0], [1], [0, 0, 1, 1], [], []>} : vector<1x32xbf16>, vector<32x128xbf16>, vector<1x128xf32> -> vector<1x128xf32>
    %81 = vector.extract_strided_slice %12 {offsets = [3, 0], sizes = [1, 128], strides = [1, 1]} : vector<8x128xf32> to vector<1x128xf32>
    %82 = arith.addf %81, %80 : vector<1x128xf32>
    %83 = arith.mulf %82, %22 : vector<1x128xf32>
    %84 = math.tanh %83 : vector<1x128xf32>
    %85 = arith.mulf %84, %22 : vector<1x128xf32>
    %86 = arith.addf %85, %25 : vector<1x128xf32>
    %87 = vector.extract_strided_slice %86 {offsets = [0, 0], sizes = [1, 32], strides = [1, 1]} : vector<1x128xf32> to vector<1x32xf32>
    %88 = vector.extract_strided_slice %86 {offsets = [0, 32], sizes = [1, 32], strides = [1, 1]} : vector<1x128xf32> to vector<1x32xf32>
    %89 = vector.extract_strided_slice %86 {offsets = [0, 64], sizes = [1, 32], strides = [1, 1]} : vector<1x128xf32> to vector<1x32xf32>
    %90 = vector.extract_strided_slice %86 {offsets = [0, 96], sizes = [1, 32], strides = [1, 1]} : vector<1x128xf32> to vector<1x32xf32>
    %91 = arith.mulf %88, %76 : vector<1x32xf32>
    %92 = arith.mulf %87, %89 : vector<1x32xf32>
    %93 = arith.addf %91, %92 : vector<1x32xf32>
    %94 = math.tanh %93 : vector<1x32xf32>
    %95 = arith.mulf %90, %94 : vector<1x32xf32>
    %96 = arith.truncf %95 : vector<1x32xf32> to vector<1x32xbf16>
    %cst_20 = arith.constant dense<0.000000e+00> : vector<1x128xf32>
    %97 = tpu.matmul %96, %13, %cst_20 {dimension_numbers = #tpu.dot_dimension_numbers<[1], [0], [0], [1], [0, 0, 1, 1], [], []>} : vector<1x32xbf16>, vector<32x128xbf16>, vector<1x128xf32> -> vector<1x128xf32>
    %98 = vector.extract_strided_slice %12 {offsets = [4, 0], sizes = [1, 128], strides = [1, 1]} : vector<8x128xf32> to vector<1x128xf32>
    %99 = arith.addf %98, %97 : vector<1x128xf32>
    %100 = arith.mulf %99, %22 : vector<1x128xf32>
    %101 = math.tanh %100 : vector<1x128xf32>
    %102 = arith.mulf %101, %22 : vector<1x128xf32>
    %103 = arith.addf %102, %25 : vector<1x128xf32>
    %104 = vector.extract_strided_slice %103 {offsets = [0, 0], sizes = [1, 32], strides = [1, 1]} : vector<1x128xf32> to vector<1x32xf32>
    %105 = vector.extract_strided_slice %103 {offsets = [0, 32], sizes = [1, 32], strides = [1, 1]} : vector<1x128xf32> to vector<1x32xf32>
    %106 = vector.extract_strided_slice %103 {offsets = [0, 64], sizes = [1, 32], strides = [1, 1]} : vector<1x128xf32> to vector<1x32xf32>
    %107 = vector.extract_strided_slice %103 {offsets = [0, 96], sizes = [1, 32], strides = [1, 1]} : vector<1x128xf32> to vector<1x32xf32>
    %108 = arith.mulf %105, %93 : vector<1x32xf32>
    %109 = arith.mulf %104, %106 : vector<1x32xf32>
    %110 = arith.addf %108, %109 : vector<1x32xf32>
    %111 = math.tanh %110 : vector<1x32xf32>
    %112 = arith.mulf %107, %111 : vector<1x32xf32>
    %113 = arith.truncf %112 : vector<1x32xf32> to vector<1x32xbf16>
    %cst_21 = arith.constant dense<0.000000e+00> : vector<1x128xf32>
    %114 = tpu.matmul %113, %13, %cst_21 {dimension_numbers = #tpu.dot_dimension_numbers<[1], [0], [0], [1], [0, 0, 1, 1], [], []>} : vector<1x32xbf16>, vector<32x128xbf16>, vector<1x128xf32> -> vector<1x128xf32>
    %115 = vector.extract_strided_slice %12 {offsets = [5, 0], sizes = [1, 128], strides = [1, 1]} : vector<8x128xf32> to vector<1x128xf32>
    %116 = arith.addf %115, %114 : vector<1x128xf32>
    %117 = arith.mulf %116, %22 : vector<1x128xf32>
    %118 = math.tanh %117 : vector<1x128xf32>
    %119 = arith.mulf %118, %22 : vector<1x128xf32>
    %120 = arith.addf %119, %25 : vector<1x128xf32>
    %121 = vector.extract_strided_slice %120 {offsets = [0, 0], sizes = [1, 32], strides = [1, 1]} : vector<1x128xf32> to vector<1x32xf32>
    %122 = vector.extract_strided_slice %120 {offsets = [0, 32], sizes = [1, 32], strides = [1, 1]} : vector<1x128xf32> to vector<1x32xf32>
    %123 = vector.extract_strided_slice %120 {offsets = [0, 64], sizes = [1, 32], strides = [1, 1]} : vector<1x128xf32> to vector<1x32xf32>
    %124 = vector.extract_strided_slice %120 {offsets = [0, 96], sizes = [1, 32], strides = [1, 1]} : vector<1x128xf32> to vector<1x32xf32>
    %125 = arith.mulf %122, %110 : vector<1x32xf32>
    %126 = arith.mulf %121, %123 : vector<1x32xf32>
    %127 = arith.addf %125, %126 : vector<1x32xf32>
    %128 = math.tanh %127 : vector<1x32xf32>
    %129 = arith.mulf %124, %128 : vector<1x32xf32>
    %130 = arith.truncf %129 : vector<1x32xf32> to vector<1x32xbf16>
    %cst_22 = arith.constant dense<0.000000e+00> : vector<1x128xf32>
    %131 = tpu.matmul %130, %13, %cst_22 {dimension_numbers = #tpu.dot_dimension_numbers<[1], [0], [0], [1], [0, 0, 1, 1], [], []>} : vector<1x32xbf16>, vector<32x128xbf16>, vector<1x128xf32> -> vector<1x128xf32>
    %132 = vector.extract_strided_slice %12 {offsets = [6, 0], sizes = [1, 128], strides = [1, 1]} : vector<8x128xf32> to vector<1x128xf32>
    %133 = arith.addf %132, %131 : vector<1x128xf32>
    %134 = arith.mulf %133, %22 : vector<1x128xf32>
    %135 = math.tanh %134 : vector<1x128xf32>
    %136 = arith.mulf %135, %22 : vector<1x128xf32>
    %137 = arith.addf %136, %25 : vector<1x128xf32>
    %138 = vector.extract_strided_slice %137 {offsets = [0, 0], sizes = [1, 32], strides = [1, 1]} : vector<1x128xf32> to vector<1x32xf32>
    %139 = vector.extract_strided_slice %137 {offsets = [0, 32], sizes = [1, 32], strides = [1, 1]} : vector<1x128xf32> to vector<1x32xf32>
    %140 = vector.extract_strided_slice %137 {offsets = [0, 64], sizes = [1, 32], strides = [1, 1]} : vector<1x128xf32> to vector<1x32xf32>
    %141 = vector.extract_strided_slice %137 {offsets = [0, 96], sizes = [1, 32], strides = [1, 1]} : vector<1x128xf32> to vector<1x32xf32>
    %142 = arith.mulf %139, %127 : vector<1x32xf32>
    %143 = arith.mulf %138, %140 : vector<1x32xf32>
    %144 = arith.addf %142, %143 : vector<1x32xf32>
    %145 = math.tanh %144 : vector<1x32xf32>
    %146 = arith.mulf %141, %145 : vector<1x32xf32>
    %147 = arith.truncf %146 : vector<1x32xf32> to vector<1x32xbf16>
    %cst_23 = arith.constant dense<0.000000e+00> : vector<1x128xf32>
    %148 = tpu.matmul %147, %13, %cst_23 {dimension_numbers = #tpu.dot_dimension_numbers<[1], [0], [0], [1], [0, 0, 1, 1], [], []>} : vector<1x32xbf16>, vector<32x128xbf16>, vector<1x128xf32> -> vector<1x128xf32>
    %149 = vector.extract_strided_slice %12 {offsets = [7, 0], sizes = [1, 128], strides = [1, 1]} : vector<8x128xf32> to vector<1x128xf32>
    %150 = arith.addf %149, %148 : vector<1x128xf32>
    %151 = arith.mulf %150, %22 : vector<1x128xf32>
    %152 = math.tanh %151 : vector<1x128xf32>
    %153 = arith.mulf %152, %22 : vector<1x128xf32>
    %154 = arith.addf %153, %25 : vector<1x128xf32>
    %155 = vector.extract_strided_slice %154 {offsets = [0, 0], sizes = [1, 32], strides = [1, 1]} : vector<1x128xf32> to vector<1x32xf32>
    %156 = vector.extract_strided_slice %154 {offsets = [0, 32], sizes = [1, 32], strides = [1, 1]} : vector<1x128xf32> to vector<1x32xf32>
    %157 = vector.extract_strided_slice %154 {offsets = [0, 64], sizes = [1, 32], strides = [1, 1]} : vector<1x128xf32> to vector<1x32xf32>
    %158 = vector.extract_strided_slice %154 {offsets = [0, 96], sizes = [1, 32], strides = [1, 1]} : vector<1x128xf32> to vector<1x32xf32>
    %159 = arith.mulf %156, %144 : vector<1x32xf32>
    %160 = arith.mulf %155, %157 : vector<1x32xf32>
    %161 = arith.addf %159, %160 : vector<1x32xf32>
    %162 = math.tanh %161 : vector<1x32xf32>
    %163 = arith.mulf %158, %162 : vector<1x32xf32>
    %164 = tpu.concatenate %44, %61, %78, %95, %112, %129, %146, %163 in 0 : vector<1x32xf32>, vector<1x32xf32>, vector<1x32xf32>, vector<1x32xf32>, vector<1x32xf32>, vector<1x32xf32>, vector<1x32xf32>, vector<1x32xf32> -> vector<8x32xf32>
    %c0_24 = arith.constant 0 : index
    %c0_25 = arith.constant 0 : index
    %165 = vector.load %arg5[%c0_24, %c0_25] : memref<32x128xf32, #tpu.memory_space<vmem>>, vector<32x128xf32>
    %cst_26 = arith.constant dense<0.000000e+00> : vector<8x128xf32>
    %166 = tpu.matmul %164, %165, %cst_26 {dimension_numbers = #tpu.dot_dimension_numbers<[1], [0], [0], [1], [0, 0, 1, 1], [], []>} : vector<8x32xf32>, vector<32x128xf32>, vector<8x128xf32> -> vector<8x128xf32>
    %c0_27 = arith.constant 0 : index
    %c0_28 = arith.constant 0 : index
    %167 = vector.load %arg6[%c0_27, %c0_28] : memref<1x128xf32, #tpu.memory_space<vmem>>, vector<1x128xf32>
    %168 = vector.broadcast %167 : vector<1x128xf32> to vector<8x128xf32>
    %169 = arith.addf %166, %168 : vector<8x128xf32>
    %170 = tpu.iota {dimensions = array<i32: 1>} : vector<8x128xi32>
    %c8_i32 = arith.constant 8 : i32
    %171 = vector.broadcast %c8_i32 : i32 to vector<8x128xi32>
    %172 = arith.cmpi slt, %170, %171 : vector<8x128xi32>
    %cst_29 = arith.constant -1.000000e+30 : f32
    %173 = vector.broadcast %cst_29 : f32 to vector<8x128xf32>
    %174 = arith.select %172, %169, %173 : vector<8x128xi1>, vector<8x128xf32>
    %cst_30 = arith.constant dense<0xFF800000> : vector<8xf32>
    %175 = vector.multi_reduction <maximumf>, %174, %cst_30 [1] : vector<8x128xf32> to vector<8xf32>
    %176 = vector.shape_cast %175 : vector<8xf32> to vector<8x1xf32>
    %177 = vector.broadcast %176 : vector<8x1xf32> to vector<8x128xf32>
    %178 = arith.subf %174, %177 : vector<8x128xf32>
    %179 = math.exp %178 : vector<8x128xf32>
    %cst_31 = arith.constant dense<0.000000e+00> : vector<8xf32>
    %180 = vector.multi_reduction <add>, %179, %cst_31 [1] : vector<8x128xf32> to vector<8xf32>
    %181 = vector.shape_cast %180 : vector<8xf32> to vector<8x1xf32>
    %182 = math.log %181 : vector<8x1xf32>
    %183 = vector.broadcast %182 : vector<8x1xf32> to vector<8x128xf32>
    %184 = arith.subf %178, %183 : vector<8x128xf32>
    %c0_32 = arith.constant 0 : index
    %c0_33 = arith.constant 0 : index
    %185 = vector.load %arg7[%c0_32, %c0_33] : memref<8x128xf32, #tpu.memory_space<vmem>>, vector<8x128xf32>
    tpu.vector_store %arg7[%c0_32, %c0_33], %184 {strides = array<i32>} : memref<8x128xf32, #tpu.memory_space<vmem>>, vector<8x128xf32>,
    return
  }
}

</mosaic_0001>

<bundles_post_ra>
// kernel: tpu_custom_call.1
= control target key start
LH: loop header
LB: loop body
LE: loop exit
PB: predicated region body
PF: predicated region fallthrough
CT: control target
= control target key end

     0   :  { %12 = vsyncpa [#allocation3], 0  ;;  %s1582_s0 = inlined_call_operand.vmem [shape: s32[8,1], index: 0, kind: input, shape index: {}]   ;;  %s1583_s1 = inlined_call_operand.hbm [shape: f32[16,32], index: 1, kind: input, shape index: {}]   ;;  %s1584_s2 = inlined_call_operand.hbm [shape: f32[32,128], index: 2, kind: input, shape index: {}]   ;;  %s1585_s3 = inlined_call_operand.vmem [shape: bf16[32,128], index: 3, kind: input, shape index: {}]   ;;  %s1586_s4 = inlined_call_operand.vmem [shape: f32[1,128], index: 4, kind: input, shape index: {}]   ;;  %s1587_s5 = inlined_call_operand.hbm [shape: f32[32,128], index: 5, kind: input, shape index: {}]   ;;  %s1588_s6 = inlined_call_operand.vmem [shape: f32[1,128], index: 6, kind: input, shape index: {}]   ;;  %s1589_s7 = inlined_call_operand.hbm [shape: f32[8,128], index: 7, kind: output, shape index: {}]  }
   0x1   :  { %13 = vsyncpa [#allocation6], 0 }
   0x2   :  { %14 = vsyncpa [#allocation4], 0  ;;  %s1296_s24 = smov [#allocation5]   ;;  %s1297_s26 = smov [#allocation2]  }
   0x3   :  { %s34_s25 = sshll.u32 %s1296_s24, 4  ;;  %s22_s27 = sshll.u32 %s1297_s26, 4  ;;  %s35_s25 = int_to_ptr.vmem [resolvable:$true] %s34_s25  ;;  %s1349_s27 = int_to_ptr.vmem [resolvable:$true] %s22_s27 }
   0x4   :  { %s1202_s30 = scalar_lea.hbm %s1584_s2, 512 }
   0x5   :  { %p1203_p0 = scmp.ne.s32.totalorder %s1584_s2, %s1202_s30  ;;  %p1206_p1 = scmp.lt.u32.totalorder %s1202_s30, %s1584_s2 }
   0x7   :  { %p1208_p2 = pnand %p1206_p1, %p1203_p0 }
   0x9   :  { %1211 = shalt.err (!%p1208_p2)
}
   0xa   :  { %s1212_s12 = scalar_lea.vmem %s35_s25, 512  ;;  %p1217_p4 = scmp.lt.s32.totalorder %s35_s25, %s35_s25 }
   0xb   :  { %p1213_p3 = scmp.ne.s32.totalorder %s35_s25, %s1212_s12  ;;  %p1218_p5 = scmp.lt.s32.totalorder %s1212_s12, %s1212_s12 }
   0xd   :  { %p1219_p6 = por %p1218_p5, %p1217_p4 }
   0xf   :  { %p1220_p7 = pnand %p1219_p6, %p1213_p3 }
  0x11   :  { %1223 = shalt.err (!%p1220_p7)
}
  0x12   :  { %s1298_s13 = smov 128   ;;  %s1299_s14 = smov 8  }
  0x13   :  { %40 = dma.hbm_to_vmem [thread:$0]  %s1584_s2, 512, %s35_s25, [#allocation6], %s1298_s13, %s1298_s13, %s1299_s14  }
  0x14   :  { %s1224_s19 = scalar_lea.hbm %s1583_s1, 256 }
  0x15   :  { %p1225_p8 = scmp.ne.s32.totalorder %s1583_s1, %s1224_s19  ;;  %p1228_p9 = scmp.lt.u32.totalorder %s1224_s19, %s1583_s1 }
  0x17   :  { %p1230_p10 = pnand %p1228_p9, %p1225_p8 }
  0x19   :  { %1233 = shalt.err (!%p1230_p10)
}
  0x1a   :  { %s1234_s24 = scalar_lea.vmem %s1349_s27, 256  ;;  %p1239_p12 = scmp.lt.s32.totalorder %s1349_s27, %s1349_s27 }
  0x1b   :  { %p1235_p11 = scmp.ne.s32.totalorder %s1349_s27, %s1234_s24  ;;  %p1240_p13 = scmp.lt.s32.totalorder %s1234_s24, %s1234_s24 }
  0x1d   :  { %p1241_p0 = por %p1240_p13, %p1239_p12 }
  0x1f   :  { %p1242_p1 = pnand %p1241_p0, %p1235_p11 }
  0x21   :  { %1245 = shalt.err (!%p1242_p1)
}
  0x22   :  { %28 = dma.hbm_to_vmem [thread:$0]  %s1583_s1, 256, %s1349_s27, [#allocation3], %s1298_s13, %s1298_s13, %s1299_s14  }
  0x23   :  { %s1300_s26 = smov [#allocation7]   ;;  %s1246_s8 = scalar_lea.hbm %s1587_s5, 512 }
  0x24   :  { %s50_s28 = sshll.u32 %s1300_s26, 4  ;;  %p1247_p2 = scmp.ne.s32.totalorder %s1587_s5, %s1246_s8  ;;  %s51_s28 = int_to_ptr.vmem [resolvable:$true] %s50_s28 }
  0x25   :  { %p1250_p3 = scmp.lt.u32.totalorder %s1246_s8, %s1587_s5 }
  0x27   :  { %p1252_p4 = pnand %p1250_p3, %p1247_p2 }
  0x29   :  { %1255 = shalt.err (!%p1252_p4)
}
  0x2a   :  { %s1256_s15 = scalar_lea.vmem %s51_s28, 512  ;;  %p1261_p6 = scmp.lt.s32.totalorder %s51_s28, %s51_s28 }
  0x2b   :  { %p1257_p5 = scmp.ne.s32.totalorder %s51_s28, %s1256_s15  ;;  %p1262_p7 = scmp.lt.s32.totalorder %s1256_s15, %s1256_s15 }
  0x2d   :  { %p1263_p8 = por %p1262_p7, %p1261_p6 }
  0x2f   :  { %p1264_p9 = pnand %p1263_p8, %p1257_p5 }
  0x31   :  { %1267 = shalt.err (!%p1264_p9)
}
  0x32   :  { %56 = dma.hbm_to_vmem [thread:$0]  %s1587_s5, 512, %s51_s28, [#allocation6], %s1298_s13, %s1298_s13, %s1299_s14  }
  0x33   :  { %1290 = dma.done.wait [#allocation3], 256  }
  0x34   :  { %1291 = vsyncadd [#allocation3], 4294967040 }
  0x35   :  { %1292 = dma.done.wait [#allocation6], 1024  }
  0x36   :  { %1293 = vsyncadd [#allocation6], 4294966272  ;;  %v1301_v0 = vmov 0   ;;  %v1302_v1 = vmov 0.0|0.0   ;;  %v69_v2 = vld [vmem:[%s1582_s0] sm:$0xff]  ;;  %v78_v3 = vld [vmem:[#allocation2] sm:$0xff]  ;;  %v70_v13 = vlaneseq }
  0x37   :  { %1163 = vset.pattern.permute.xlu0 %v1301_v0  ;;  %1135 = vmatprep.subr.bf16.mxu0 %v1302_v1  ;;  %v79_v4 = vld [vmem:[#allocation2 + $0x8] sm:$0xff]  ;;  %vm1303_vm0 = vmmov 0   ;;  %v1304_v6 = vmov 0.0   ;;  %v154_v7 = vld [vmem:[#allocation5] sm:$0xff]  ;;  %v155_v8 = vld [vmem:[#allocation5 + $0x8] sm:$0xff]  ;;  %vm80_vm1 = vcmask 130048  }
  0x38   :  { %1138 = vmatprep.subr.bf16.mxu1 %v1302_v1  ;;  %73 = vperm.xlu0 %1163, %v69_v2   ;;  %v1136_v5 = vpack.c.bf16 %v79_v4, %v78_v3  ;;  %v1139_v9 = vpack.c.bf16 %v155_v8, %v154_v7  ;;  %v156_v10 = vld [vmem:[#allocation5 + $0x10] sm:$0xff]  ;;  %v157_v11 = vld [vmem:[#allocation5 + $0x18] sm:$0xff]  ;;  %v1413_v14 = vand.u32 127, %v70_v13  ;;  %v1418_v16 = vld [vmem:[%s1585_s3] sm:$0xff]   ;;  %vm165_vm3 = vcmask 261120   ;;  %s1307_s19 = smov 32  }
  0x39   :  { %1046 = vmatprep.mubr.msk.f32.mxu0 %vm1303_vm0, %v1304_v6  ;;  %1057 = vmatprep.mubr.msk.f32.mxu1 %vm1303_vm0, %v1304_v6  ;;  %v1142_v12 = vpack.c.bf16 %v157_v11, %v156_v10  ;;  %v1426_v18 = vld [vmem:[%s1585_s3 + $0x8] sm:$0xff]   ;;  %v992_v25 = vld [vmem:[%s1586_s4] ss:$0 sm:$0xff]  ;;  %v1305_v29 = vmov 0.5   ;;  %s1306_s4 = smov 64   ;;  %vm861_vm7 = vcmask 1040384  }
  0x3a   :  { %1137 = vmatpush3.bf16.msra.mxu0 %v1136_v5  ;;  %1140 = vmatpush3.bf16.msra.mxu1 %v1139_v9  ;;  %vm243_vm4 = vcmp.ge.s32.totalorder %v1413_v14, 64  ;;  %vm244_vm5 = vcmp.lt.s32.totalorder %v1413_v14, 96  ;;  %vm863_vm8 = vcmask 1041408   ;;  %vm865_vm9 = vcmask 1042432   ;;  %s1308_s22 = smov [#allocation8]  }
  0x3b   :  { %1060 = vmatprep.subr.bf16.mxu0 %v1304_v6  ;;  %1141 = vmatprep.subr.bf16.mxu1 %v1302_v1  ;;  %vm245_vm6 = vmand %vm243_vm4, %vm244_vm5  ;;  %vm867_vm10 = vcmask 1043456   ;;  %vm869_vm11 = vcmask 1044480   ;;  %vm871_vm12 = vcmask 1045504   ;;  %vm873_vm13 = vcmask 1046528   ;;  %s980_s23 = sshll.u32 %s1308_s22, 4  ;;  %s981_s23 = int_to_ptr.vmem [resolvable:$true] %s980_s23 }
  0x3c   :  { %v1453_v30 = vsel %vm245_vm6, 1.0, %v1305_v29  ;;  %v1457_v34 = vsel %vm245_vm6, 0.0, %v1305_v29  ;;  %vm961_vm14 = vcmp.lt.s32.totalorder %v1413_v14, 8  ;;  %p1273_p11 = scmp.lt.s32.totalorder %s981_s23, %s981_s23 }
  0x3e   :  { %1143 = vmatpush3.bf16.msra.mxu1 %v1142_v12 }
  0x3f   :  { %1068 = vmatprep.subr.bf16.mxu1 %v1304_v6 }
  0xb7   :  { %v74_v15 = vpop.permute.xlu0 %73 }
  0xb8   :  { %vm75_vm2 = vcmp.eq.s32.totalorder %v1413_v14, %v74_v15 }
  0xb9   :  { %v990_v17 = vsel %vm75_vm2, 1.0, %v1304_v6 }
  0xba   :  { %1047 = vmatmul.mubr.msk.f32.vlgmr.msra.gmra.mrb[0].mxu0 %vm80_vm1, %v990_v17 }
  0xbb   :  { %1061 = vmatpush3.bf16.msra.mxu0 %v1418_v16  ;;  %1064 = vmatprep.mubr.msk.bf16.mxu0 %vm1303_vm0, %v1304_v6 }
  0xbc   :  { %1062 = vmatprep.subr.bf16.mxu0 %v1304_v6 }
  0xbf   :  { %1063 = vmatpush3.bf16.msra.mxu0 %v1426_v18 }
  0xc0   :  { %1076 = vmatprep.subr.bf16.mxu0 %v1304_v6 }
  0xc2   :  { %1065 = vmatmul.mubr.bf16.vlgmr.msra.gmra.mrb[4].mxu0 %v1301_v0 }
  0xc3   :  { %1077 = vmatpush3.bf16.msra.mxu0 %v1418_v16  ;;  %1080 = vmatprep.mubr.msk.bf16.mxu0 %vm1303_vm0, %v1304_v6 }
  0xc4   :  { %1078 = vmatprep.subr.bf16.mxu0 %v1304_v6 }
  0xc7   :  { %1079 = vmatpush3.bf16.msra.mxu0 %v1426_v18 }
  0xc8   :  { %1092 = vmatprep.subr.bf16.mxu0 %v1304_v6 }
 0x18d   :  { %v150_v19 = vpop.f32.mrb[0].mxu0 }
 0x18e   :  { %v1048_v20 = vpop.f32.mrb[1].mxu0  ;;  %1058 = vmatmul.mubr.msk.f32.vlgmr.msra.gmra.mrb[0].mxu1 %vm165_vm3, %v150_v19 }
 0x18f   :  { %1069 = vmatpush3.bf16.msra.mxu1 %v1418_v16  ;;  %1072 = vmatprep.mubr.msk.bf16.mxu1 %vm1303_vm0, %v1304_v6 }
 0x190   :  { %1070 = vmatprep.subr.bf16.mxu1 %v1304_v6 }
 0x193   :  { %1071 = vmatpush3.bf16.msra.mxu1 %v1426_v18 }
 0x194   :  { %1084 = vmatprep.subr.bf16.mxu1 %v1304_v6 }
 0x195   :  { %v297_v21 = vpop.f32.mrb[4].mxu0 }
 0x196   :  { %v1066_v22 = vpop.f32.mrb[5].mxu0 }
 0x197   :  { %v300_v23 = vpop.f32.mrb[6].mxu0 }
 0x198   :  { %v1067_v24 = vpop.f32.mrb[7].mxu0 }
 0x261   :  { %v235_v26 = vpop.f32.mrb[0].mxu1 }
 0x262   :  { %v1451_v27 = vadd.f32 %v992_v25, %v235_v26  ;;  %v1059_v28 = vpop.f32.mrb[1].mxu1 }
 0x264   :  { %v303_v31 = vadd.f32 %v297_v21, %v1451_v27 }
 0x266   :  { %v304_v32 = vmul.f32 %v303_v31, %v1453_v30 }
 0x268   :  { %1166 = vtanh.f32 %v304_v32 }
 0x272   :  { %v1167_v33 = vpop.eup %1166 }
 0x273   :  { %v306_v35 = vmul.f32 %v1167_v33, %v1453_v30 }
 0x275   :  { %v307_v36 = vadd.f32 %v306_v35, %v1457_v34 }
 0x277   :  { %310 = vrot.lane.b32.xlu0 %v307_v36, %s1306_s4  ;;  %v308_v39 = vmul.f32 0.0, %v307_v36 }
 0x2e9   :  { %v311_v37 = vpop.permute.xlu0 %310 }
 0x2ea   :  { %v313_v38 = vmul.f32 %v311_v37, %v307_v36 }
 0x2ec   :  { %315 = vrot.lane.b32.xlu1 %v313_v38, %s1307_s19 }
 0x35e   :  { %v316_v40 = vpop.permute.xlu1 %315 }
 0x35f   :  { %v318_v41 = vadd.f32 %v316_v40, %v308_v39 }
 0x361   :  { %1168 = vtanh.f32 %v318_v41  ;;  %v381_v59 = vrot.slane %v318_v41, 7 }
 0x36b   :  { %v1169_v42 = vpop.eup %1168 }
 0x36c   :  { %321 = vrot.lane.b32.xlu1 %v1169_v42, %s1306_s4 }
 0x3de   :  { %v322_v43 = vpop.permute.xlu1 %321 }
 0x3df   :  { %v1464_v44 = vmul.f32 %v322_v43, %v307_v36 }
 0x3e1   :  { %v325_v45 = vpack.c.bf16 %v1464_v44, %v1464_v44 }
 0x3e3   :  { %327 = vrot.lane.b32.xlu0 %v325_v45, %s1307_s19 }
 0x455   :  { %v328_v46 = vpop.permute.xlu0 %327 }
 0x456   :  { %1073 = vmatmul.mubr.msk.bf16.vlgmr.msra.gmra.mrb[4].mxu1 %vm165_vm3, %v328_v46 }
 0x457   :  { %1085 = vmatpush3.bf16.msra.mxu1 %v1418_v16  ;;  %1088 = vmatprep.mubr.msk.bf16.mxu1 %vm1303_vm0, %v1304_v6 }
 0x458   :  { %1086 = vmatprep.subr.bf16.mxu1 %v1304_v6 }
 0x45b   :  { %1087 = vmatpush3.bf16.msra.mxu1 %v1426_v18 }
 0x45c   :  { %1100 = vmatprep.subr.bf16.mxu1 %v1304_v6 }
 0x529   :  { %v366_v47 = vpop.f32.mrb[4].mxu1 }
 0x52a   :  { %v373_v48 = vrot.slane %v366_v47, 7  ;;  %v1074_v49 = vpop.f32.mrb[5].mxu1 }
 0x52b   :  { %v369_v50 = vpop.f32.mrb[6].mxu1 }
 0x52c   :  { %v375_v51 = vadd.f32 %v373_v48, %v1451_v27  ;;  %v1075_v52 = vpop.f32.mrb[7].mxu1 }
 0x52e   :  { %v376_v53 = vmul.f32 %v375_v51, %v1453_v30 }
 0x530   :  { %1170 = vtanh.f32 %v376_v53 }
 0x53a   :  { %v1171_v54 = vpop.eup %1170 }
 0x53b   :  { %v378_v55 = vmul.f32 %v1171_v54, %v1453_v30 }
 0x53d   :  { %v379_v56 = vadd.f32 %v378_v55, %v1457_v34 }
 0x53f   :  { %385 = vrot.lane.b32.xlu1 %v379_v56, %s1306_s4  ;;  %v383_v60 = vmul.f32 %v381_v59, %v379_v56 }
 0x5b1   :  { %v386_v57 = vpop.permute.xlu1 %385 }
 0x5b2   :  { %v388_v58 = vmul.f32 %v386_v57, %v379_v56 }
 0x5b4   :  { %390 = vrot.lane.b32.xlu0 %v388_v58, %s1307_s19 }
 0x626   :  { %v391_v61 = vpop.permute.xlu0 %390 }
 0x627   :  { %v393_v62 = vadd.f32 %v391_v61, %v383_v60 }
 0x629   :  { %1172 = vtanh.f32 %v393_v62  ;;  %v458_v22 = vrot.slane %v393_v62, 7 }
 0x633   :  { %v1173_v63 = vpop.eup %1172 }
 0x634   :  { %396 = vrot.lane.b32.xlu1 %v1173_v63, %s1306_s4 }
 0x6a6   :  { %v397_v0 = vpop.permute.xlu1 %396 }
 0x6a7   :  { %v399_v2 = vmul.f32 %v397_v0, %v379_v56 }
 0x6a9   :  { %v400_v3 = vpack.c.bf16 %v399_v2, %v399_v2  ;;  %v862_v31 = vsel %vm861_vm7, %v1464_v44, %v399_v2 }
 0x6ab   :  { %v402_v4 = vshrl.u32 %v400_v3, 16 }
 0x6ad   :  { %404 = vrot.lane.b32.xlu0 %v402_v4, %s1307_s19 }
 0x71f   :  { %v405_v5 = vpop.permute.xlu0 %404 }
 0x720   :  { %1081 = vmatmul.mubr.msk.bf16.vlgmr.msra.gmra.mrb[8].mxu0 %vm165_vm3, %v405_v5 }
 0x721   :  { %1093 = vmatpush3.bf16.msra.mxu0 %v1418_v16  ;;  %1096 = vmatprep.mubr.msk.bf16.mxu0 %vm1303_vm0, %v1304_v6 }
 0x722   :  { %1094 = vmatprep.subr.bf16.mxu0 %v1304_v6 }
 0x725   :  { %1095 = vmatpush3.bf16.msra.mxu0 %v1426_v18 }
 0x726   :  { %1108 = vmatprep.subr.bf16.mxu0 %v1304_v6 }
 0x7f3   :  { %v443_v7 = vpop.f32.mrb[8].mxu0 }
 0x7f4   :  { %v450_v8 = vrot.slane %v443_v7, 6  ;;  %v1082_v9 = vpop.f32.mrb[9].mxu0 }
 0x7f5   :  { %v446_v10 = vpop.f32.mrb[10].mxu0 }
 0x7f6   :  { %v452_v11 = vadd.f32 %v450_v8, %v1451_v27  ;;  %v1083_v12 = vpop.f32.mrb[11].mxu0 }
 0x7f8   :  { %v453_v13 = vmul.f32 %v452_v11, %v1453_v30 }
 0x7fa   :  { %1174 = vtanh.f32 %v453_v13 }
 0x804   :  { %v1175_v15 = vpop.eup %1174 }
 0x805   :  { %v455_v17 = vmul.f32 %v1175_v15, %v1453_v30 }
 0x807   :  { %v456_v19 = vadd.f32 %v455_v17, %v1457_v34 }
 0x809   :  { %462 = vrot.lane.b32.xlu1 %v456_v19, %s1306_s4  ;;  %v460_v23 = vmul.f32 %v458_v22, %v456_v19 }
 0x87b   :  { %v463_v20 = vpop.permute.xlu1 %462 }
 0x87c   :  { %v465_v21 = vmul.f32 %v463_v20, %v456_v19 }
 0x87e   :  { %467 = vrot.lane.b32.xlu0 %v465_v21, %s1307_s19 }
 0x8f0   :  { %v468_v24 = vpop.permute.xlu0 %467 }
 0x8f1   :  { %v470_v25 = vadd.f32 %v468_v24, %v460_v23 }
 0x8f3   :  { %1176 = vtanh.f32 %v470_v25  ;;  %v534_v49 = vrot.slane %v470_v25, 7 }
 0x8fd   :  { %v1177_v26 = vpop.eup %1176 }
 0x8fe   :  { %473 = vrot.lane.b32.xlu1 %v1177_v26, %s1306_s4 }
 0x970   :  { %v474_v28 = vpop.permute.xlu1 %473 }
 0x971   :  { %v476_v29 = vmul.f32 %v474_v28, %v456_v19 }
 0x973   :  { %v477_v32 = vpack.c.bf16 %v476_v29, %v476_v29  ;;  %v864_v33 = vsel %vm863_vm8, %v862_v31, %v476_v29 }
 0x975   :  { %v479_v35 = vrot.slane %v477_v32, 1 }
 0x977   :  { %480 = vrot.lane.b32.xlu0 %v479_v35, %s1307_s19 }
 0x9e9   :  { %v481_v36 = vpop.permute.xlu0 %480 }
 0x9ea   :  { %1089 = vmatmul.mubr.msk.bf16.vlgmr.msra.gmra.mrb[8].mxu1 %vm165_vm3, %v481_v36 }
 0x9eb   :  { %1101 = vmatpush3.bf16.msra.mxu1 %v1418_v16  ;;  %1104 = vmatprep.mubr.msk.bf16.mxu1 %vm1303_vm0, %v1304_v6 }
 0x9ec   :  { %1102 = vmatprep.subr.bf16.mxu1 %v1304_v6 }
 0x9ef   :  { %1103 = vmatpush3.bf16.msra.mxu1 %v1426_v18 }
 0x9f0   :  { %1116 = vmatprep.subr.bf16.mxu1 %v1304_v6 }
 0xabd   :  { %v519_v37 = vpop.f32.mrb[8].mxu1 }
 0xabe   :  { %v526_v38 = vrot.slane %v519_v37, 5  ;;  %v1090_v39 = vpop.f32.mrb[9].mxu1 }
 0xabf   :  { %v522_v40 = vpop.f32.mrb[10].mxu1 }
 0xac0   :  { %v528_v41 = vadd.f32 %v526_v38, %v1451_v27  ;;  %v1091_v42 = vpop.f32.mrb[11].mxu1 }
 0xac2   :  { %v529_v43 = vmul.f32 %v528_v41, %v1453_v30 }
 0xac4   :  { %1178 = vtanh.f32 %v529_v43 }
 0xace   :  { %v1179_v44 = vpop.eup %1178 }
 0xacf   :  { %v531_v45 = vmul.f32 %v1179_v44, %v1453_v30 }
 0xad1   :  { %v532_v46 = vadd.f32 %v531_v45, %v1457_v34 }
 0xad3   :  { %538 = vrot.lane.b32.xlu1 %v532_v46, %s1306_s4  ;;  %v536_v50 = vmul.f32 %v534_v49, %v532_v46 }
 0xb45   :  { %v539_v47 = vpop.permute.xlu1 %538 }
 0xb46   :  { %v541_v48 = vmul.f32 %v539_v47, %v532_v46 }
 0xb48   :  { %543 = vrot.lane.b32.xlu0 %v541_v48, %s1307_s19 }
 0xbba   :  { %v544_v51 = vpop.permute.xlu0 %543 }
 0xbbb   :  { %v546_v52 = vadd.f32 %v544_v51, %v536_v50 }
 0xbbd   :  { %1180 = vtanh.f32 %v546_v52  ;;  %v612_v11 = vrot.slane %v546_v52, 7 }
 0xbc7   :  { %v1181_v53 = vpop.eup %1180 }
 0xbc8   :  { %549 = vrot.lane.b32.xlu1 %v1181_v53, %s1306_s4 }
 0xc3a   :  { %v550_v54 = vpop.permute.xlu1 %549 }
 0xc3b   :  { %v552_v55 = vmul.f32 %v550_v54, %v532_v46 }
 0xc3d   :  { %v553_v56 = vpack.c.bf16 %v552_v55, %v552_v55  ;;  %v866_v57 = vsel %vm865_vm9, %v864_v33, %v552_v55 }
 0xc3f   :  { %v555_v58 = vshrl.u32 %v553_v56, 16 }
 0xc41   :  { %v557_v59 = vrot.slane %v555_v58, 1 }
 0xc43   :  { %558 = vrot.lane.b32.xlu0 %v557_v59, %s1307_s19 }
 0xcb5   :  { %v559_v60 = vpop.permute.xlu0 %558 }
 0xcb6   :  { %1097 = vmatmul.mubr.msk.bf16.vlgmr.msra.gmra.mrb[12].mxu0 %vm165_vm3, %v559_v60 }
 0xcb7   :  { %1109 = vmatpush3.bf16.msra.mxu0 %v1418_v16  ;;  %1112 = vmatprep.mubr.msk.bf16.mxu0 %vm1303_vm0, %v1304_v6 }
 0xcb8   :  { %1110 = vmatprep.subr.bf16.mxu0 %v1304_v6 }
 0xcbb   :  { %1111 = vmatpush3.bf16.msra.mxu0 %v1426_v18 }
 0xcbc   :  { %1144 = vmatprep.subr.bf16.mxu0 %v1302_v1 }
 0xd89   :  { %v597_v61 = vpop.f32.mrb[12].mxu0 }
 0xd8a   :  { %v604_v62 = vrot.slane %v597_v61, 4  ;;  %v1098_v63 = vpop.f32.mrb[13].mxu0 }
 0xd8b   :  { %v600_v0 = vpop.f32.mrb[14].mxu0 }
 0xd8c   :  { %v606_v2 = vadd.f32 %v604_v62, %v1451_v27  ;;  %v1099_v3 = vpop.f32.mrb[15].mxu0 }
 0xd8e   :  { %v607_v4 = vmul.f32 %v606_v2, %v1453_v30 }
 0xd90   :  { %1182 = vtanh.f32 %v607_v4 }
 0xd9a   :  { %v1183_v5 = vpop.eup %1182 }
 0xd9b   :  { %v609_v7 = vmul.f32 %v1183_v5, %v1453_v30 }
 0xd9d   :  { %v610_v8 = vadd.f32 %v609_v7, %v1457_v34 }
 0xd9f   :  { %616 = vrot.lane.b32.xlu1 %v610_v8, %s1306_s4  ;;  %v614_v12 = vmul.f32 %v612_v11, %v610_v8 }
 0xe11   :  { %v617_v9 = vpop.permute.xlu1 %616 }
 0xe12   :  { %v619_v10 = vmul.f32 %v617_v9, %v610_v8 }
 0xe14   :  { %621 = vrot.lane.b32.xlu0 %v619_v10, %s1307_s19 }
 0xe86   :  { %v622_v13 = vpop.permute.xlu0 %621 }
 0xe87   :  { %v624_v15 = vadd.f32 %v622_v13, %v614_v12 }
 0xe89   :  { %1184 = vtanh.f32 %v624_v15 }
 0xe93   :  { %v1185_v17 = vpop.eup %1184 }
 0xe94   :  { %627 = vrot.lane.b32.xlu1 %v1185_v17, %s1306_s4 }
 0xf06   :  { %v628_v19 = vpop.permute.xlu1 %627 }
 0xf07   :  { %v630_v20 = vmul.f32 %v628_v19, %v610_v8 }
 0xf09   :  { %v631_v21 = vpack.c.bf16 %v630_v20, %v630_v20  ;;  %v868_v22 = vsel %vm867_vm10, %v866_v57, %v630_v20 }
 0xf0b   :  { %v633_v23 = vrot.slane %v631_v21, 2 }
 0xf0d   :  { %634 = vrot.lane.b32.xlu0 %v633_v23, %s1307_s19 }
 0xf7f   :  { %v635_v24 = vpop.permute.xlu0 %634 }
 0xf80   :  { %1105 = vmatmul.mubr.msk.bf16.vlgmr.msra.gmra.mrb[12].mxu1 %vm165_vm3, %v635_v24 }
 0xf81   :  { %1117 = vmatpush3.bf16.msra.mxu1 %v1418_v16  ;;  %1120 = vmatprep.mubr.msk.bf16.mxu1 %vm1303_vm0, %v1304_v6 }
 0xf82   :  { %1118 = vmatprep.subr.bf16.mxu1 %v1304_v6 }
 0xf85   :  { %1119 = vmatpush3.bf16.msra.mxu1 %v1426_v18  ;;  %v688_v18 = vrot.slane %v624_v15, 7 }
0x1053   :  { %v673_v25 = vpop.f32.mrb[12].mxu1 }
0x1054   :  { %v680_v26 = vrot.slane %v673_v25, 3  ;;  %v1106_v28 = vpop.f32.mrb[13].mxu1 }
0x1055   :  { %v676_v29 = vpop.f32.mrb[14].mxu1 }
0x1056   :  { %v682_v31 = vadd.f32 %v680_v26, %v1451_v27  ;;  %v1107_v32 = vpop.f32.mrb[15].mxu1 }
0x1057   :  { %v877_v32 = vld [vmem:[#allocation7 + $0x10] sm:$0xff] }
0x1058   :  { %v683_v33 = vmul.f32 %v682_v31, %v1453_v30  ;;  %v876_v31 = vld [vmem:[#allocation7 + $0x8] sm:$0xff] }
0x105a   :  { %1186 = vtanh.f32 %v683_v33 }
0x1064   :  { %v1187_v35 = vpop.eup %1186 }
0x1065   :  { %v685_v16 = vmul.f32 %v1187_v35, %v1453_v30  ;;  %v878_v35 = vld [vmem:[#allocation7 + $0x18] sm:$0xff] }
0x1067   :  { %v686_v36 = vadd.f32 %v685_v16, %v1457_v34 }
0x1069   :  { %692 = vrot.lane.b32.xlu1 %v686_v36, %s1306_s4  ;;  %v690_v39 = vmul.f32 %v688_v18, %v686_v36  ;;  %v1003_v18 = vld [vmem:[%s1588_s6] ss:$0 sm:$0xff]  ;;  %s1268_s6 = scalar_lea.vmem %s981_s23, 128 }
0x106a   :  { %p1269_p10 = scmp.ne.s32.totalorder %s981_s23, %s1268_s6  ;;  %p1274_p12 = scmp.lt.s32.totalorder %s1268_s6, %s1268_s6 }
0x106c   :  { %p1275_p13 = por %p1274_p12, %p1273_p11 }
0x106e   :  { %p1276_p0 = pnand %p1275_p13, %p1269_p10 }
0x10db   :  { %v693_v37 = vpop.permute.xlu1 %692 }
0x10dc   :  { %v695_v38 = vmul.f32 %v693_v37, %v686_v36 }
0x10de   :  { %697 = vrot.lane.b32.xlu0 %v695_v38, %s1307_s19 }
0x1150   :  { %v698_v40 = vpop.permute.xlu0 %697 }
0x1151   :  { %v700_v41 = vadd.f32 %v698_v40, %v690_v39 }
0x1153   :  { %1188 = vtanh.f32 %v700_v41 }
0x115d   :  { %v1189_v42 = vpop.eup %1188 }
0x115e   :  { %703 = vrot.lane.b32.xlu1 %v1189_v42, %s1306_s4 }
0x11d0   :  { %v704_v43 = vpop.permute.xlu1 %703 }
0x11d1   :  { %v706_v44 = vmul.f32 %v704_v43, %v686_v36 }
0x11d3   :  { %v707_v45 = vpack.c.bf16 %v706_v44, %v706_v44  ;;  %v870_v46 = vsel %vm869_vm11, %v868_v22, %v706_v44 }
0x11d5   :  { %v709_v47 = vshrl.u32 %v707_v45, 16 }
0x11d7   :  { %v711_v48 = vrot.slane %v709_v47, 2 }
0x11d9   :  { %712 = vrot.lane.b32.xlu0 %v711_v48, %s1307_s19 }
0x124b   :  { %v713_v49 = vpop.permute.xlu0 %712 }
0x124c   :  { %1113 = vmatmul.mubr.msk.bf16.vlgmr.msra.gmra.mrb[16].mxu0 %vm165_vm3, %v713_v49 }
0x124d   :  { %1132 = vmatprep.mubr.msk.f32.mxu0 %vm1303_vm0, %v1304_v6  ;;  %v766_v6 = vrot.slane %v700_v41, 7 }
0x131f   :  { %v751_v50 = vpop.f32.mrb[16].mxu0 }
0x1320   :  { %v758_v51 = vrot.slane %v751_v50, 2  ;;  %v1114_v52 = vpop.f32.mrb[17].mxu0 }
0x1321   :  { %v754_v53 = vpop.f32.mrb[18].mxu0 }
0x1322   :  { %v760_v54 = vadd.f32 %v758_v51, %v1451_v27  ;;  %v1115_v55 = vpop.f32.mrb[19].mxu0 }
0x1324   :  { %v761_v56 = vmul.f32 %v760_v54, %v1453_v30 }
0x1326   :  { %1190 = vtanh.f32 %v761_v56 }
0x1330   :  { %v1191_v57 = vpop.eup %1190 }
0x1331   :  { %v763_v58 = vmul.f32 %v1191_v57, %v1453_v30 }
0x1333   :  { %v764_v59 = vadd.f32 %v763_v58, %v1457_v34 }
0x1335   :  { %770 = vrot.lane.b32.xlu1 %v764_v59, %s1306_s4  ;;  %v768_v62 = vmul.f32 %v766_v6, %v764_v59 }
0x13a7   :  { %v771_v60 = vpop.permute.xlu1 %770 }
0x13a8   :  { %v773_v61 = vmul.f32 %v771_v60, %v764_v59 }
0x13aa   :  { %775 = vrot.lane.b32.xlu0 %v773_v61, %s1307_s19 }
0x141c   :  { %v776_v63 = vpop.permute.xlu0 %775 }
0x141d   :  { %v778_v0 = vadd.f32 %v776_v63, %v768_v62 }
0x141f   :  { %1192 = vtanh.f32 %v778_v0  ;;  %v842_v25 = vrot.slane %v778_v0, 7 }
0x1429   :  { %v1193_v2 = vpop.eup %1192 }
0x142a   :  { %781 = vrot.lane.b32.xlu1 %v1193_v2, %s1306_s4 }
0x149c   :  { %v782_v3 = vpop.permute.xlu1 %781 }
0x149d   :  { %v784_v4 = vmul.f32 %v782_v3, %v764_v59 }
0x149f   :  { %v785_v5 = vpack.c.bf16 %v784_v4, %v784_v4  ;;  %v872_v7 = vsel %vm871_vm12, %v870_v46, %v784_v4 }
0x14a1   :  { %v787_v8 = vrot.slane %v785_v5, 3 }
0x14a3   :  { %788 = vrot.lane.b32.xlu0 %v787_v8, %s1307_s19 }
0x1515   :  { %v789_v9 = vpop.permute.xlu0 %788 }
0x1516   :  { %1121 = vmatmul.mubr.msk.bf16.vlgmr.msra.gmra.mrb[16].mxu1 %vm165_vm3, %v789_v9 }
0x15e9   :  { %v827_v10 = vpop.f32.mrb[16].mxu1 }
0x15ea   :  { %v834_v11 = vrot.slane %v827_v10, 1  ;;  %v1122_v12 = vpop.f32.mrb[17].mxu1 }
0x15eb   :  { %v830_v13 = vpop.f32.mrb[18].mxu1 }
0x15ec   :  { %v836_v15 = vadd.f32 %v834_v11, %v1451_v27  ;;  %v1123_v17 = vpop.f32.mrb[19].mxu1  ;;  %v875_v27 = vld [vmem:[#allocation7] sm:$0xff] }
0x15ed   :  { %v1145_v33 = vpack.c.bf16 %v876_v31, %v875_v27 }
0x15ee   :  { %v837_v19 = vmul.f32 %v836_v15, %v1453_v30 }
0x15ef   :  { %1146 = vmatpush3.bf16.msra.mxu0 %v1145_v33 }
0x15f0   :  { %1194 = vtanh.f32 %v837_v19  ;;  %1147 = vmatprep.subr.bf16.mxu0 %v1302_v1 }
0x15fa   :  { %v1195_v20 = vpop.eup %1194 }
0x15fb   :  { %v839_v21 = vmul.f32 %v1195_v20, %v1453_v30  ;;  %v1148_v30 = vpack.c.bf16 %v878_v35, %v877_v32 }
0x15fd   :  { %v840_v22 = vadd.f32 %v839_v21, %v1457_v34  ;;  %1149 = vmatpush3.bf16.msra.mxu0 %v1148_v30 }
0x15ff   :  { %846 = vrot.lane.b32.xlu1 %v840_v22, %s1306_s4  ;;  %v844_v26 = vmul.f32 %v842_v25, %v840_v22 }
0x1671   :  { %v847_v23 = vpop.permute.xlu1 %846 }
0x1672   :  { %v849_v24 = vmul.f32 %v847_v23, %v840_v22 }
0x1674   :  { %851 = vrot.lane.b32.xlu0 %v849_v24, %s1307_s19 }
0x16e6   :  { %v852_v28 = vpop.permute.xlu0 %851 }
0x16e7   :  { %v854_v29 = vadd.f32 %v852_v28, %v844_v26 }
0x16e9   :  { %1196 = vtanh.f32 %v854_v29 }
0x16f3   :  { %v1197_v34 = vpop.eup %1196 }
0x16f4   :  { %857 = vrot.lane.b32.xlu1 %v1197_v34, %s1306_s4 }
0x1766   :  { %v858_v16 = vpop.permute.xlu1 %857 }
0x1767   :  { %v860_v36 = vmul.f32 %v858_v16, %v840_v22 }
0x1769   :  { %v874_v37 = vsel %vm873_vm13, %v872_v7, %v860_v36 }
0x176a   :  { %887 = vrot.lane.b32.xlu0 %v874_v37, %s1307_s19 }
0x17dc   :  { %v888_v38 = vpop.permute.xlu0 %887 }
0x17dd   :  { %1133 = vmatmul.mubr.msk.f32.vlgmr.msra.gmra.mrb[2].mxu0 %vm165_vm3, %v888_v38 }
0x18b0   :  { %v957_v39 = vpop.f32.mrb[2].mxu0 }
0x18b1   :  { %v958_v1 = vadd.f32 %v1003_v18, %v957_v39  ;;  %v1134_v40 = vpop.f32.mrb[3].mxu0 }
0x18b3   :  { %v962_v41 = vsel %vm961_vm14, %v958_v1, -1e+30 }
0x18b4   :  { %963 = vmax.xlane.f32.xlu1 %v962_v41 }
0x1941   :  { %v964_v42 = vpop.xlane.xlu1 %963 }
0x1942   :  { %v965_v43 = vsub.f32 %v962_v41, %v964_v42 }
0x1944   :  { %v966_v44 = vmul.f32 1.442695, %v965_v43 }
0x1946   :  { %1198 = vpow2.f32 %v966_v44 }
0x1950   :  { %v1199_v45 = vpop.eup %1198 }
0x1951   :  { %968 = vadd.xlane.f32.xlu0 %v1199_v45 }
0x19de   :  { %v969_v46 = vpop.xlane.xlu0 %968 }
0x19df   :  { %1200 = vlog2.f32 %v969_v46 }
0x19e9   :  { %v1201_v47 = vpop.eup %1200 }
0x19ea   :  { %v971_v48 = vmul.f32 0.6931472, %v1201_v47 }
0x19ec   :  { %v972_v49 = vsub.f32 %v965_v43, %v971_v48 }
0x19ee   :  { %973 = vst [vmem:[#allocation8] sm:$0xff] %v972_v49 }
0x19ef   :  { %1279 = shalt.err (!%p1276_p0)
}
0x19f0   :  { %s1280_s25 = scalar_lea.hbm %s1589_s7, 128 }
0x19f1   :  { %p1281_p1 = scmp.ne.s32.totalorder %s1589_s7, %s1280_s25  ;;  %p1284_p2 = scmp.lt.u32.totalorder %s1280_s25, %s1589_s7 }
0x19f3   :  { %p1286_p3 = pnand %p1284_p2, %p1281_p1 }
0x19f5   :  { %1289 = shalt.err (!%p1286_p3)
}
0x19f6   :  { %983 = dma.vmem_to_hbm [thread:$0]  %s981_s23, 128, %s1589_s7, [#allocation4]  }
0x19f7   :  { %1294 = dma.done.wait [#allocation4], 128  }
0x19f8   :  { %1295 = vsyncadd [#allocation4], 4294967168 }
0x19f9   :  { %987 = vsyncpa [#allocation3], 1 }
0x19fa   :  { %988 = vsyncpa [#allocation6], 1 }
0x19fb   :  { %989 = vsyncpa [#allocation4], 1 }

</bundles_post_ra>
